<compile_context>
chip_gen: v5e
topology: v5e:2x2
jax: 0.10.0
libtpu: 0.0.40
codegen_flags: <defaults>
</compile_context>

<pallas_src>
import math

import jax
import jax.numpy as jnp
from jax.experimental import pallas as pl
from jax.experimental.pallas import tpu as pltpu

ORDERS = 2
NUM_MATRICES = 2 * ORDERS + 1          # 5 (identity + 2 supports * 2 orders)


def _pick_batch_tile(B, F):
    """Batch-fold factor TB: TB*F <= 128 (one MXU weight-tile depth for the
    block-diagonal Theta) and G = ceil(B/TB) >= 2 (megacore / DMA pipelining)."""
    tb_bd = max(1, 128 // max(F, 1))
    tb_grid = max(1, (B + 1) // 2)
    return max(1, min(tb_bd, tb_grid))


def _vmem_limit_bytes():
    """Generation-aware scoped-VMEM budget with headroom for internal scratch."""
    cap = 64 * 1024 * 1024                       # conservative default (v7x per-TC)
    try:
        cap = int(pltpu.get_tpu_info().vmem_capacity_bytes)
    except Exception:
        pass
    return int(min(max(cap * 3 // 5, 32 * 1024 * 1024), 96 * 1024 * 1024))


def d_gcn_kernel(x_ref, at_ref, theta_ref, bias_ref, out_ref):
    # x_ref:     (1, N, TB*F)                     tile of TB batch elems, col = t*F + f
    # at_ref:    (S, N, N)                        pre-transposed supports (A^T)
    # theta_ref: (NUM_MATRICES, TB*F, TB*Cpad)    block-diagonal-expanded Theta
    # bias_ref:  (1, TB*Cpad)                     bias tiled per batch-within-tile
    # out_ref:   (1, N, TB*Cpad)
    x0 = x_ref[0]                                 # (N, TB*F) f32

    def dense(v, m):
        # un-reshaped term straight into the MXU against block-diag Theta slice m
        return jnp.dot(v, theta_ref[m], preferred_element_type=jnp.float32)

    def diffuse(v, si):
        # A^T @ v  ==  einsum('bnf,nw->bwf') in the folded layout
        return jnp.dot(at_ref[si], v, preferred_element_type=jnp.float32)

    # Chebyshev-style diffusion terms with the PyTorch carry quirk (x0 is NOT
    # reset between supports):  terms = [X, T1, T2, T3, T4]
    #   T1 = Aq^T X, T2 = 2 Aq^T T1 - X, T3 = Ah^T T1, T4 = 2 Ah^T T3 - T1
    # The Theta contraction is fused into the recurrence: only x1/xc0 stay live.
    acc = dense(x0, 0)
    m = 1
    xc0 = x0
    for si in range(at_ref.shape[0]):
        x1 = diffuse(xc0, si)
        acc = acc + dense(x1, m)
        m += 1
        for _k in range(2, ORDERS + 1):
            x2 = 2.0 * diffuse(x1, si) - xc0
            acc = acc + dense(x2, m)
            m += 1
            x1, xc0 = x2, x1

    out = jnp.maximum(acc + bias_ref[...], 0.0)   # bias (1, TB*Cpad) broadcasts; ReLU
    out_ref[0] = out.astype(out_ref.dtype)        # lane-dense store (TB*Cpad % 128 == 0)


def d_gcn_forward(X, supports, theta, bias):
    """X: (B, N, F) f32; supports: sequence of (N, N); theta: (F*5, Cout); bias: (Cout,)."""
    B, N, F = X.shape
    Cout = theta.shape[1]
    assert theta.shape[0] == F * NUM_MATRICES

    # ---- wrapper-side layout plumbing (cheap XLA ops, no kernel compute) ----
    TB = _pick_batch_tile(B, F)
    B_pad = -(-B // TB) * TB                       # pad batch to a multiple of TB
    if B_pad != B:
        X = jnp.pad(X, ((0, B_pad - B), (0, 0), (0, 0)))
    G = B_pad // TB                                # >= 2 whenever B >= 2

    # (B_pad, N, F) -> (G, N, TB*F); column = (t within tile)*F + f, b = g*TB + t
    Xf = X.reshape(G, TB, N, F).transpose(0, 2, 1, 3).reshape(G, N, TB * F)

    # Pre-transposed, packed supports: one operand, one DMA, no in-kernel relayout.
    AT = jnp.stack([jnp.transpose(s) for s in supports], axis=0)   # (S, N, N)
    S = AT.shape[0]

    # Lane-dense output channels: pad Cout to a multiple of 128, slice back later.
    Cpad = ((Cout + 127) // 128) * 128
    theta_p = jnp.pad(theta, ((0, 0), (0, Cpad - Cout)))           # (F*5, Cpad)

    # Block-diagonal Theta: ThetaBD[m, t*F + f, u*Cpad + c] = (t==u) * Theta[m*F+f, c]
    theta_m = theta_p.reshape(NUM_MATRICES, F, Cpad)
    eye_tb = jnp.eye(TB, dtype=theta_p.dtype)
    theta_bd = jnp.einsum('tu,mfc->mtfuc', eye_tb, theta_m).reshape(
        NUM_MATRICES, TB * F, TB * Cpad)

    bias_p = jnp.tile(jnp.pad(bias, (0, Cpad - Cout)), (TB,)).reshape(1, TB * Cpad)

    out_f = pl.pallas_call(
        d_gcn_kernel,
        out_shape=jax.ShapeDtypeStruct((G, N, TB * Cpad), X.dtype),
        grid=(G,),
        in_specs=[
            pl.BlockSpec((1, N, TB * F), lambda i: (i, 0, 0)),
            # Grid-invariant operands: constant index map + single pipeline buffer.
            pl.BlockSpec((S, N, N), lambda i: (0, 0, 0),
                         pipeline_mode=pl.Buffered(1)),
            pl.BlockSpec((NUM_MATRICES, TB * F, TB * Cpad), lambda i: (0, 0, 0),
                         pipeline_mode=pl.Buffered(1)),
            pl.BlockSpec((1, TB * Cpad), lambda i: (0, 0),
                         pipeline_mode=pl.Buffered(1)),
        ],
        out_specs=pl.BlockSpec((1, N, TB * Cpad), lambda i: (i, 0, 0)),
        compiler_params=pltpu.CompilerParams(
            dimension_semantics=("parallel",),      # batch tiles are independent
            vmem_limit_bytes=_vmem_limit_bytes(),
        ),
    )(Xf, AT, theta_bd, bias_p)

    # (G, N, TB*Cpad) -> (B, N, Cout); col = t*Cpad + c, global batch b = g*TB + t
    out = out_f.reshape(G, N, TB, Cpad).transpose(0, 2, 1, 3).reshape(B_pad, N, Cpad)
    return out[:B, :, :Cout]


def d_gcn_reference(X, supports, theta, bias):
    """Pure-JAX transcription of the PyTorch forward, for verification."""
    x0 = X
    xs = [x0]
    for s in supports:
        x1 = jnp.einsum('bnf,nw->bwf', x0, s)
        xs.append(x1)
        for _k in range(2, ORDERS + 1):
            x2 = 2.0 * jnp.einsum('bnf,nw->bwf', x1, s) - x0
            xs.append(x2)
            x1, x0 = x2, x1
    x = jnp.stack(xs, axis=0)                       # (5, B, N, F)
    x = jnp.transpose(x, (1, 2, 0, 3))              # (B, N, 5, F)
    B, N = X.shape[0], X.shape[1]
    x = x.reshape(B, N, -1)
    x = jnp.matmul(x, theta) + bias
    return jnp.maximum(x, 0.0)


if __name__ == "__main__":
    B, N, Fin, Cout = 2, 16, 8, 32

    key = jax.random.PRNGKey(0)
    kx, ka, kb, kt, kbias = jax.random.split(key, 5)

    X = jax.random.normal(kx, (B, N, Fin), dtype=jnp.float32)

    # Two diffusion supports (row-normalized random transition matrices).
    A_q = jax.random.uniform(ka, (N, N), dtype=jnp.float32)
    A_h = jax.random.uniform(kb, (N, N), dtype=jnp.float32)
    A_q = A_q / jnp.sum(A_q, axis=-1, keepdims=True)
    A_h = A_h / jnp.sum(A_h, axis=-1, keepdims=True)

    # Deterministic parameter init mirroring reset_parameters (uniform(-stdv, stdv)).
    stdv = 1.0 / math.sqrt(Cout)
    theta = jax.random.uniform(kt, (Fin * NUM_MATRICES, Cout),
                               dtype=jnp.float32, minval=-stdv, maxval=stdv)
    stdv1 = 1.0 / math.sqrt(Cout)
    bias = jax.random.uniform(kbias, (Cout,),
                              dtype=jnp.float32, minval=-stdv1, maxval=stdv1)

    out = d_gcn_forward(X, (A_q, A_h), theta, bias)
    out = jax.block_until_ready(out)

    ref = d_gcn_reference(X, (A_q, A_h), theta, bias)
    assert out.shape == (B, N, Cout)
    assert jnp.allclose(out, ref, atol=1e-5, rtol=1e-5), "Pallas output mismatch vs reference"

    print("KERNEL_OK")
</pallas_src>

<mosaic_0001>
module attributes {stable_mosaic.version = 11 : i64} {
  func.func @d_gcn_kernel(%arg0: i32, %arg1: memref<1x16x8xf32, #tpu.memory_space<vmem>>, %arg2: memref<2x16x16xf32, #tpu.memory_space<vmem>>, %arg3: memref<5x8x128xf32, #tpu.memory_space<vmem>>, %arg4: memref<1x128xf32, #tpu.memory_space<vmem>>, %arg5: memref<1x16x128xf32, #tpu.memory_space<vmem>>) attributes {dimension_semantics = [#tpu.dimension_semantics<parallel>], iteration_bounds = array<i64: 2>, scalar_prefetch = 0 : i64, scratch_operands = 0 : i64, tpu.core_type = #tpu.core_type<tc>, window_params = [{transform_indices = @transform_0, window_bounds = array<i64: 1, 16, 8>}, {pipeline_mode = #tpu.pipeline_mode<synchronous>, transform_indices = @transform_1, window_bounds = array<i64: 2, 16, 16>}, {pipeline_mode = #tpu.pipeline_mode<synchronous>, transform_indices = @transform_2, window_bounds = array<i64: 5, 8, 128>}, {pipeline_mode = #tpu.pipeline_mode<synchronous>, transform_indices = @transform_3, window_bounds = array<i64: 1, 128>}, {transform_indices = @transform_4, window_bounds = array<i64: 1, 16, 128>}]} {
    %c0 = arith.constant 0 : index
    %c0_0 = arith.constant 0 : index
    %c0_1 = arith.constant 0 : index
    %0 = vector.load %arg1[%c0, %c0_0, %c0_1] : memref<1x16x8xf32, #tpu.memory_space<vmem>>, vector<1x16x8xf32>
    %1 = vector.shape_cast %0 : vector<1x16x8xf32> to vector<16x8xf32>
    %c0_2 = arith.constant 0 : index
    %c0_3 = arith.constant 0 : index
    %c0_4 = arith.constant 0 : index
    %2 = vector.load %arg3[%c0_2, %c0_3, %c0_4] : memref<5x8x128xf32, #tpu.memory_space<vmem>>, vector<1x8x128xf32>
    %3 = vector.shape_cast %2 : vector<1x8x128xf32> to vector<8x128xf32>
    %cst = arith.constant dense<0.000000e+00> : vector<16x128xf32>
    %4 = tpu.matmul %1, %3, %cst {dimension_numbers = #tpu.dot_dimension_numbers<[1], [0], [0], [1], [0, 0, 1, 1], [], []>} : vector<16x8xf32>, vector<8x128xf32>, vector<16x128xf32> -> vector<16x128xf32>
    %c0_5 = arith.constant 0 : index
    %c0_6 = arith.constant 0 : index
    %c0_7 = arith.constant 0 : index
    %5 = vector.load %arg2[%c0_5, %c0_6, %c0_7] : memref<2x16x16xf32, #tpu.memory_space<vmem>>, vector<1x16x16xf32>
    %6 = vector.shape_cast %5 : vector<1x16x16xf32> to vector<16x16xf32>
    %cst_8 = arith.constant dense<0.000000e+00> : vector<16x8xf32>
    %7 = tpu.matmul %6, %1, %cst_8 {dimension_numbers = #tpu.dot_dimension_numbers<[1], [0], [0], [1], [0, 0, 1, 1], [], []>} : vector<16x16xf32>, vector<16x8xf32>, vector<16x8xf32> -> vector<16x8xf32>
    %c1 = arith.constant 1 : index
    %c0_9 = arith.constant 0 : index
    %c0_10 = arith.constant 0 : index
    %8 = vector.load %arg3[%c1, %c0_9, %c0_10] : memref<5x8x128xf32, #tpu.memory_space<vmem>>, vector<1x8x128xf32>
    %9 = vector.shape_cast %8 : vector<1x8x128xf32> to vector<8x128xf32>
    %cst_11 = arith.constant dense<0.000000e+00> : vector<16x128xf32>
    %10 = tpu.matmul %7, %9, %cst_11 {dimension_numbers = #tpu.dot_dimension_numbers<[1], [0], [0], [1], [0, 0, 1, 1], [], []>} : vector<16x8xf32>, vector<8x128xf32>, vector<16x128xf32> -> vector<16x128xf32>
    %11 = arith.addf %4, %10 : vector<16x128xf32>
    %c0_12 = arith.constant 0 : index
    %c0_13 = arith.constant 0 : index
    %c0_14 = arith.constant 0 : index
    %12 = vector.load %arg2[%c0_12, %c0_13, %c0_14] : memref<2x16x16xf32, #tpu.memory_space<vmem>>, vector<1x16x16xf32>
    %13 = vector.shape_cast %12 : vector<1x16x16xf32> to vector<16x16xf32>
    %cst_15 = arith.constant dense<0.000000e+00> : vector<16x8xf32>
    %14 = tpu.matmul %13, %7, %cst_15 {dimension_numbers = #tpu.dot_dimension_numbers<[1], [0], [0], [1], [0, 0, 1, 1], [], []>} : vector<16x16xf32>, vector<16x8xf32>, vector<16x8xf32> -> vector<16x8xf32>
    %cst_16 = arith.constant 2.000000e+00 : f32
    %15 = vector.broadcast %cst_16 : f32 to vector<16x8xf32>
    %16 = arith.mulf %15, %14 : vector<16x8xf32>
    %17 = arith.subf %16, %1 : vector<16x8xf32>
    %c2 = arith.constant 2 : index
    %c0_17 = arith.constant 0 : index
    %c0_18 = arith.constant 0 : index
    %18 = vector.load %arg3[%c2, %c0_17, %c0_18] : memref<5x8x128xf32, #tpu.memory_space<vmem>>, vector<1x8x128xf32>
    %19 = vector.shape_cast %18 : vector<1x8x128xf32> to vector<8x128xf32>
    %cst_19 = arith.constant dense<0.000000e+00> : vector<16x128xf32>
    %20 = tpu.matmul %17, %19, %cst_19 {dimension_numbers = #tpu.dot_dimension_numbers<[1], [0], [0], [1], [0, 0, 1, 1], [], []>} : vector<16x8xf32>, vector<8x128xf32>, vector<16x128xf32> -> vector<16x128xf32>
    %21 = arith.addf %11, %20 : vector<16x128xf32>
    %c1_20 = arith.constant 1 : index
    %c0_21 = arith.constant 0 : index
    %c0_22 = arith.constant 0 : index
    %22 = vector.load %arg2[%c1_20, %c0_21, %c0_22] : memref<2x16x16xf32, #tpu.memory_space<vmem>>, vector<1x16x16xf32>
    %23 = vector.shape_cast %22 : vector<1x16x16xf32> to vector<16x16xf32>
    %cst_23 = arith.constant dense<0.000000e+00> : vector<16x8xf32>
    %24 = tpu.matmul %23, %7, %cst_23 {dimension_numbers = #tpu.dot_dimension_numbers<[1], [0], [0], [1], [0, 0, 1, 1], [], []>} : vector<16x16xf32>, vector<16x8xf32>, vector<16x8xf32> -> vector<16x8xf32>
    %c3 = arith.constant 3 : index
    %c0_24 = arith.constant 0 : index
    %c0_25 = arith.constant 0 : index
    %25 = vector.load %arg3[%c3, %c0_24, %c0_25] : memref<5x8x128xf32, #tpu.memory_space<vmem>>, vector<1x8x128xf32>
    %26 = vector.shape_cast %25 : vector<1x8x128xf32> to vector<8x128xf32>
    %cst_26 = arith.constant dense<0.000000e+00> : vector<16x128xf32>
    %27 = tpu.matmul %24, %26, %cst_26 {dimension_numbers = #tpu.dot_dimension_numbers<[1], [0], [0], [1], [0, 0, 1, 1], [], []>} : vector<16x8xf32>, vector<8x128xf32>, vector<16x128xf32> -> vector<16x128xf32>
    %28 = arith.addf %21, %27 : vector<16x128xf32>
    %c1_27 = arith.constant 1 : index
    %c0_28 = arith.constant 0 : index
    %c0_29 = arith.constant 0 : index
    %29 = vector.load %arg2[%c1_27, %c0_28, %c0_29] : memref<2x16x16xf32, #tpu.memory_space<vmem>>, vector<1x16x16xf32>
    %30 = vector.shape_cast %29 : vector<1x16x16xf32> to vector<16x16xf32>
    %cst_30 = arith.constant dense<0.000000e+00> : vector<16x8xf32>
    %31 = tpu.matmul %30, %24, %cst_30 {dimension_numbers = #tpu.dot_dimension_numbers<[1], [0], [0], [1], [0, 0, 1, 1], [], []>} : vector<16x16xf32>, vector<16x8xf32>, vector<16x8xf32> -> vector<16x8xf32>
    %cst_31 = arith.constant 2.000000e+00 : f32
    %32 = vector.broadcast %cst_31 : f32 to vector<16x8xf32>
    %33 = arith.mulf %32, %31 : vector<16x8xf32>
    %34 = arith.subf %33, %7 : vector<16x8xf32>
    %c4 = arith.constant 4 : index
    %c0_32 = arith.constant 0 : index
    %c0_33 = arith.constant 0 : index
    %35 = vector.load %arg3[%c4, %c0_32, %c0_33] : memref<5x8x128xf32, #tpu.memory_space<vmem>>, vector<1x8x128xf32>
    %36 = vector.shape_cast %35 : vector<1x8x128xf32> to vector<8x128xf32>
    %cst_34 = arith.constant dense<0.000000e+00> : vector<16x128xf32>
    %37 = tpu.matmul %34, %36, %cst_34 {dimension_numbers = #tpu.dot_dimension_numbers<[1], [0], [0], [1], [0, 0, 1, 1], [], []>} : vector<16x8xf32>, vector<8x128xf32>, vector<16x128xf32> -> vector<16x128xf32>
    %38 = arith.addf %28, %37 : vector<16x128xf32>
    %c0_35 = arith.constant 0 : index
    %c0_36 = arith.constant 0 : index
    %39 = vector.load %arg4[%c0_35, %c0_36] : memref<1x128xf32, #tpu.memory_space<vmem>>, vector<1x128xf32>
    %40 = vector.broadcast %39 : vector<1x128xf32> to vector<16x128xf32>
    %41 = arith.addf %38, %40 : vector<16x128xf32>
    %cst_37 = arith.constant 0.000000e+00 : f32
    %42 = vector.broadcast %cst_37 : f32 to vector<16x128xf32>
    %43 = arith.maximumf %41, %42 : vector<16x128xf32>
    %c0_38 = arith.constant 0 : index
    %c0_39 = arith.constant 0 : index
    %c0_40 = arith.constant 0 : index
    %44 = vector.load %arg5[%c0_38, %c0_39, %c0_40] : memref<1x16x128xf32, #tpu.memory_space<vmem>>, vector<1x16x128xf32>
    %45 = vector.shape_cast %44 : vector<1x16x128xf32> to vector<16x128xf32>
    %46 = vector.shape_cast %43 : vector<16x128xf32> to vector<1x16x128xf32>
    tpu.vector_store %arg5[%c0_38, %c0_39, %c0_40], %46 {strides = array<i32>} : memref<1x16x128xf32, #tpu.memory_space<vmem>>, vector<1x16x128xf32>,
    return
  }
  func.func @transform_0(%arg0: i32) -> (i32, i32, i32) {
    %c0_i32 = arith.constant 0 : i32
    %c0_i32_0 = arith.constant 0 : i32
    %c0_i32_1 = arith.constant 0 : i32
    return %arg0, %c0_i32, %c0_i32_0 : i32, i32, i32
  }
  func.func @transform_1(%arg0: i32) -> (i32, i32, i32) {
    %c0_i32 = arith.constant 0 : i32
    %c0_i32_0 = arith.constant 0 : i32
    %c0_i32_1 = arith.constant 0 : i32
    %c0_i32_2 = arith.constant 0 : i32
    return %c0_i32, %c0_i32_0, %c0_i32_1 : i32, i32, i32
  }
  func.func @transform_2(%arg0: i32) -> (i32, i32, i32) {
    %c0_i32 = arith.constant 0 : i32
    %c0_i32_0 = arith.constant 0 : i32
    %c0_i32_1 = arith.constant 0 : i32
    %c0_i32_2 = arith.constant 0 : i32
    return %c0_i32, %c0_i32_0, %c0_i32_1 : i32, i32, i32
  }
  func.func @transform_3(%arg0: i32) -> (i32, i32) {
    %c0_i32 = arith.constant 0 : i32
    %c0_i32_0 = arith.constant 0 : i32
    %c0_i32_1 = arith.constant 0 : i32
    return %c0_i32, %c0_i32_0 : i32, i32
  }
  func.func @transform_4(%arg0: i32) -> (i32, i32, i32) {
    %c0_i32 = arith.constant 0 : i32
    %c0_i32_0 = arith.constant 0 : i32
    %c0_i32_1 = arith.constant 0 : i32
    return %arg0, %c0_i32, %c0_i32_0 : i32, i32, i32
  }
}

</mosaic_0001>

<bundles_post_ra>
// kernel: tpu_custom_call.1
= control target key start
LH: loop header
LB: loop body
LE: loop exit
PB: predicated region body
PF: predicated region fallthrough
CT: control target
= control target key end

     0   :  { %9 = vsyncpa [#allocation3], 0  ;;  %s947_s0 = inlined_call_operand.vmem [shape: f32[2,16,8], index: 0, kind: input, shape index: {}]   ;;  %s948_s1 = inlined_call_operand.hbm [shape: f32[2,16,16], index: 1, kind: input, shape index: {}]   ;;  %s949_s2 = inlined_call_operand.vmem [shape: f32[5,8,128], index: 2, kind: input, shape index: {}]   ;;  %s950_s3 = inlined_call_operand.vmem [shape: f32[1,128], index: 3, kind: input, shape index: {}]   ;;  %s951_s4 = inlined_call_operand.hbm [shape: f32[2,16,128], index: 4, kind: output, shape index: {}]  }
   0x1   :  { %10 = vsyncpa [#allocation4], 0 }
   0x2   :  { %12 = vsyncpa [#allocation4 + $0x1], 0  ;;  %s816_s15 = smov 0   ;;  %s818_s16 = smov 0  }
   0x3   :  { %s820_s17 = smov 0   ;;  %s822_s18 = smov 0  }
   0x4 LB: > { %s837_s19 = sadd.s32 4294967295, %s784_s18   ;;  %s594_s20 = sadd.s32 4294967294, %s784_s18   ;;  %s784_s18 = sphi %s822_s18, %s957_s18   ;;  %s780_s17 = sphi %s820_s17, %s956_s17   ;;  %s776_s16 = sphi %s818_s16, %s955_s16   ;;  %s772_s15 = sphi %s816_s15, %s954_s15  }
   0x5   : > { %s841_s21 = sadd.s32 1, %s784_s18   ;;  %s114_s22 = sadd.s32 1, %s780_s17 }
   0x6   : > { %s111_s23 = ssub.s32 %s784_s18, %s841_s21  ;;  %p124_p0 = scmp.ne.s32.totalorder %s780_s17, %s776_s16 }
   0x7   : > { %p112_p1 = scmp.eq.s32.totalorder %s111_s23, 0  ;;  %p125_p2 = scmp.eq.s32.totalorder %s837_s19, 1 }
   0x8   : > { %p130_p3 = scmp.ne.s32.totalorder %s776_s16, %s772_s15  ;;  %p131_p4 = scmp.eq.s32.totalorder %s594_s20, 1 }
   0x9   : > { %s852_s24 = scalar_select %p112_p1, %s780_s17, %s114_s22  }
   0xa   : > { %p854_p5 = por %p125_p2, %p124_p0  ;;  %p858_p6 = por %p131_p4, %p130_p3 }
   0xb   : > { %p595_p7 = scmp.ge.s32.totalorder %s784_s18, 1  ;;  %p138_p8 = scmp.lt.s32.totalorder %s784_s18, 3 }
   0xc   : > { %p647_p9 = scmp.eq.s32.totalorder %s837_s19, 0  ;;  %s149_s29 = sshll.u32 %s948_s1, 4  ;;  %s150_s29 = int_to_ptr.hbm [resolvable:$true] %s149_s29 }
   0xd   : > { %p139_p10 = pnand %p595_p7, %p138_p8  ;;  %s786_s30 = smov [#allocation2]  }
   0xe   : > { %s151_s5 = sshll.u32 %s786_s30, 4  ;;  %s787_s6 = smov 128   ;;  %s152_s5 = int_to_ptr.vmem [resolvable:$true] %s151_s5 }
   0xf   : > { %p639_p11 = pneg %p139_p10  ;;  %s788_s7 = smov 8  }
  0x10   : > { %181 = sbr.rel (%p139_p10) target bundleno = 613 (0x265), region = 36 }
  0x11   : > { %p640_p12 = pnand %p647_p9, %p639_p11 }
  0x13   : > { %642 = dma.hbm_to_vmem [thread:$0]  (!%p640_p12), %s150_s29, 512, %s152_s5, [#allocation3], %s787_s6, %s787_s6, %s788_s7  }
  0x15   : > { %763 = dma.done.wait (%p647_p9), [#allocation3], 512  }
  0x16   : > { %765 = vsyncadd (%p647_p9), [#allocation3], 4294966784  ;;  %p208_p13 = scmp.lt.s32.totalorder %s837_s19, 1  ;;  %v216_v2 = vld [vmem:[#allocation2] sm:$0xff]  ;;  %vm218_vm0 = vcmask 130048   ;;  %v217_v3 = vld [vmem:[#allocation2 + $0x8] sm:$0xff] }
  0x17   : > { %v605_v4 = vld [vmem:[%s949_s2 + $0x8] sm:$0xff]  ;;  %v215_v5 = vld [vmem:[%s949_s2] sm:$0xff]  ;;  %vm250_vm1 = vcmask 64512   ;;  %v370_v8 = vld [vmem:[#allocation2 + $0x10] sm:$0xff]  ;;  %s205_s6 = sand.u32 1, %s776_s16   ;;  %s631_s10 = sshll.u32 %s837_s19, 4 }
  0x18   : > { %s209_s8 = scalar_select %p208_p13, %s837_s19, 1  ;;  %272 = vmatpush.msra.mxu1 %v605_v4  ;;  %632 = vmatpush.msra.mxu2 %v605_v4  ;;  %v371_v9 = vld [vmem:[#allocation2 + $0x18] sm:$0xff]  ;;  %v612_v10 = vld [vmem:[%s949_s2 + $0x10] sm:$0xff]  ;;  %v622_v24 = vld [vmem:[%s949_s2 + $0x20] sm:$0xff] }
  0x19   : > { %v617_v11 = vld [vmem:[%s949_s2 + $0x18] sm:$0xff]  ;;  %v687_v38 = vld [vmem:[%s950_s3] ss:$0 sm:$0xff]  ;;  %s516_s14 = scalar_lea.hbm %s951_s4, %s631_s10  ;;  %s505_s19 = scalar_lea.sflag [#allocation4], %s205_s6 }
  0x1a   : > { %s630_s9 = sshll.u32 %s209_s8, 4  ;;  %301 = vmatpush.msrb.mxu2 %v215_v5  ;;  %359 = vmatpush.msrb.mxu1 %v612_v10  ;;  %s519_s22 = sshll.u32 %s516_s14, 4  ;;  %s520_s22 = int_to_ptr.hbm [resolvable:$true] %s519_s22 }
  0x1b   : > { %s212_s12 = scalar_lea.vmem %s947_s0, %s630_s9  ;;  %s600_s9 = sshll.u32 %s205_s6, 4 }
  0x1c   : > { %v214_v0 = vld [vmem:[%s212_s12 + $0x8] sm:$0xff]  ;;  %v213_v1 = vld [vmem:[%s212_s12] sm:$0xff]  ;;  %s207_s11 = scalar_lea.vmem [#allocation5], %s600_s9  ;;  %s732_s23 = sshra.s32 %s520_s22, 4  ;;  %s733_s23 = int_to_ptr.hbm [resolvable:$true] %s732_s23 }
  0x1d   : > { %239 = vmatpush.msra.mxu0 %v214_v0  ;;  %s517_s20 = sshll.u32 %s207_s11, 4  ;;  %s734_s27 = scalar_lea.hbm %s733_s23, 16  ;;  %s518_s20 = int_to_ptr.vmem [resolvable:$true] %s517_s20 }
  0x1e   : > { %p735_p0 = scmp.ne.s32.totalorder %s733_s23, %s734_s27  ;;  %s738_s30 = scalar_lea.hbm %s951_s4, 32 }
  0x1f   : > { %240 = vmatpush.msra.mxu0 %v213_v1  ;;  %p739_p3 = scmp.lt.s32.totalorder %s733_s23, %s951_s4  ;;  %p740_p4 = scmp.lt.s32.totalorder %s738_s30, %s734_s27 }
  0x20   : > { %603 = vmatmul.msk.f32.vlgmr.msra.gmra.mxu0 %vm218_vm0, %v216_v2  ;;  %p736_p1 = pnand %p735_p0, %p854_p5 }
  0x21   : > { %424 = vmatpush.msrb.mxu0 %v617_v11  ;;  %p741_p7 = por %p740_p4, %p739_p3 }
  0x22   : > { %p737_p2 = pneg %p736_p1 }
  0x24   : > { %p742_p8 = pnand %p741_p7, %p737_p2 }
  0x28   : > { %604 = vmatmul.msk.f32.gmra.mxu0 %vm218_vm0, %v217_v3 }
  0x9d   : > { %v242_v6 = vpop.f32.mrf.mxu0 }
  0x9e   : > { %606 = vmatmul.msk.f32.vlgmr.msra.gmra.mxu1 %vm250_vm1, %v242_v6 }
  0x9f   : > { %484 = vmatpush.msra.mxu1 %v622_v24 }
  0xa5   : > { %v245_v7 = vpop.f32.mrf.mxu0 }
  0xa6   : > { %607 = vmatmul.msk.f32.vlgmr.msra.gmra.mxu2 %vm250_vm1, %v245_v7  ;;  %323 = vmatpush.msra.mxu3 %v245_v7 }
  0xa7   : > { %392 = vmatpush.msra.mxu2 %v245_v7 }
  0xa8   : > { %324 = vmatpush.msra.mxu3 %v242_v6 }
  0xa9   : > { %393 = vmatpush.msra.mxu2 %v242_v6  ;;  %610 = vmatmul.msk.f32.vlgmr.msra.gmra.mxu3 %vm218_vm0, %v216_v2 }
  0xae   : > { %608 = vmatmul.msk.f32.vlgmr.msrb.gmra.mxu2 %vm250_vm1, %v213_v1 }
  0xb1   : > { %611 = vmatmul.msk.f32.gmra.mxu3 %vm218_vm0, %v217_v3 }
  0xb6   : > { %609 = vmatmul.msk.f32.gmra.mxu2 %vm250_vm1, %v214_v0 }
  0xbe   : > { %615 = vmatmul.msk.f32.vlgmr.msra.gmra.mxu2 %vm218_vm0, %v370_v8 }
  0xc6   : > { %616 = vmatmul.msk.f32.gmra.mxu2 %vm218_vm0, %v371_v9 }
 0x11b   : > { %v274_v31 = vpop.f32.mrf.mxu1 }
 0x129   : > { %v277_v12 = vpop.f32.mrf.mxu2 }
 0x12c   : > { %v326_v13 = vpop.f32.mrf.mxu3 }
 0x12d   : > { %v332_v14 = vmul.f32 2.0, %v326_v13 }
 0x12f   : > { %v334_v15 = vsub.f32 %v332_v14, %v213_v1 }
 0x131   : > { %v303_v16 = vpop.f32.mrf.mxu2  ;;  %613 = vmatmul.msk.f32.vlgmr.msrb.gmra.mxu1 %vm250_vm1, %v334_v15 }
 0x132   : > { %v304_v35 = vadd.f32 %v303_v16, %v274_v31 }
 0x134   : > { %v329_v17 = vpop.f32.mrf.mxu3 }
 0x135   : > { %v333_v18 = vmul.f32 2.0, %v329_v17 }
 0x137   : > { %v335_v19 = vsub.f32 %v333_v18, %v214_v0 }
 0x139   : > { %v306_v20 = vpop.f32.mrf.mxu2  ;;  %614 = vmatmul.msk.f32.gmra.mxu1 %vm250_vm1, %v335_v19 }
 0x13a   : > { %v307_v21 = vadd.f32 %v306_v20, %v277_v12 }
 0x141   : > { %v395_v22 = vpop.f32.mrf.mxu2 }
 0x142   : > { %618 = vmatmul.msk.f32.vlgmr.msrb.gmra.mxu0 %vm250_vm1, %v395_v22 }
 0x149   : > { %v398_v23 = vpop.f32.mrf.mxu2 }
 0x14a   : > { %619 = vmatmul.msk.f32.gmra.mxu0 %vm250_vm1, %v398_v23  ;;  %448 = vmatpush.msrb.mxu3 %v398_v23 }
 0x14c   : > { %449 = vmatpush.msrb.mxu3 %v395_v22 }
 0x14d   : > { %620 = vmatmul.msk.f32.vlgmr.msrb.gmra.mxu3 %vm218_vm0, %v370_v8 }
 0x155   : > { %621 = vmatmul.msk.f32.gmra.mxu3 %vm218_vm0, %v371_v9 }
 0x1ae   : > { %v361_v32 = vpop.f32.mrf.mxu1 }
 0x1af   : > { %v367_v36 = vadd.f32 %v361_v32, %v304_v35 }
 0x1b6   : > { %v364_v33 = vpop.f32.mrf.mxu1 }
 0x1b7   : > { %v368_v43 = vadd.f32 %v364_v33, %v307_v21 }
 0x1bf   : > { %v426_v34 = vpop.f32.mrf.mxu0 }
 0x1c0   : > { %v432_v37 = vadd.f32 %v426_v34, %v367_v36 }
 0x1c7   : > { %v429_v42 = vpop.f32.mrf.mxu0 }
 0x1c8   : > { %v433_v45 = vadd.f32 %v429_v42, %v368_v43 }
 0x1d0   : > { %v451_v25 = vpop.f32.mrf.mxu3 }
 0x1d1   : > { %v457_v26 = vmul.f32 2.0, %v451_v25 }
 0x1d3   : > { %v459_v27 = vsub.f32 %v457_v26, %v242_v6 }
 0x1d5   : > { %623 = vmatmul.msk.f32.vlgmr.msra.gmra.mxu1 %vm250_vm1, %v459_v27 }
 0x1d8   : > { %v454_v28 = vpop.f32.mrf.mxu3 }
 0x1d9   : > { %v458_v29 = vmul.f32 2.0, %v454_v28 }
 0x1db   : > { %v460_v30 = vsub.f32 %v458_v29, %v245_v7 }
 0x1dd   : > { %624 = vmatmul.msk.f32.gmra.mxu1 %vm250_vm1, %v460_v30 }
 0x252   : > { %v486_v39 = vpop.f32.mrf.mxu1 }
 0x253   : > { %v492_v40 = vadd.f32 %v486_v39, %v432_v37 }
 0x255   : > { %v498_v41 = vadd.f32 %v687_v38, %v492_v40 }
 0x257   : > { %v500_v44 = vmax.f32 %v498_v41, 0.0 }
 0x259   : > { %502 = vst [vmem:[%s207_s11] sm:$0xff] %v500_v44 }
 0x25a   : > { %v489_v46 = vpop.f32.mrf.mxu1 }
 0x25b   : > { %v493_v47 = vadd.f32 %v489_v46, %v433_v45 }
 0x25d   : > { %v499_v48 = vadd.f32 %v687_v38, %v493_v47 }
 0x25f   : > { %v501_v49 = vmax.f32 %v499_v48, 0.0 }
 0x261   : > { %503 = vst [vmem:[%s207_s11 + $0x8] sm:$0xff] %v501_v49 }
 0x262   : > { %745 = shalt.err (!%p742_p8)
}
 0x263   : > { %s789_s6 = smov 128   ;;  %s790_s8 = smov 8  }
 0x264   : > { %637 = dma.vmem_to_hbm [thread:$0]  (%p854_p5), %s518_s20, 256, %s520_s22, %s505_s19, %s789_s6, %s789_s6, %s790_s8  }
 0x265 PF: > { %p649_p9 = scmp.ge.s32.totalorder %s784_s18, 2  ;;  %s534_s9 = sand.u32 1, %s772_s15  }
 0x266   : > { %s535_s10 = scalar_lea.sflag [#allocation4], %s534_s9 }
 0x267   : > { %p644_p10 = pnand %p649_p9, %p858_p6 }
 0x269   : > { %p645_p11 = pneg %p644_p10 }
 0x26b   : > { %767 = dma.done.wait (%p645_p11), %s535_s10, 256  }
 0x26c   : > { %769 = vsyncadd (%p645_p11), %s535_s10, 4294967040  ;;  %p15_p12 = scmp.ge.s32.totalorder %s841_s21, 4   ;;  %s954_s15 = smov %s776_s16 }
 0x26d   : > { %s955_s16 = smov %s780_s17  ;;  %s956_s17 = smov %s852_s24 }
 0x26e   : > { %s957_s18 = smov %s841_s21  ;;  %17 = sbr.rel (!%p15_p12) target bundleno = 4 (0x4), region = 81 }
 0x273   :  { %541 = vsyncpa [#allocation3], 1 }
 0x274   :  { %543 = vsyncpa [#allocation3 + $0x1], 1 }
 0x275   :  { %544 = vsyncpa [#allocation4], 1 }
 0x276   :  { %546 = vsyncpa [#allocation4 + $0x1], 1 }

</bundles_post_ra>
